<compile_context>
chip_gen: v5e
topology: v5e:2x2
jax: 0.10.0
libtpu: 0.0.40
codegen_flags: <defaults>
</compile_context>

<pallas_src>
import functools
import math

import jax
import jax.numpy as jnp
from jax.experimental import pallas as pl
from jax.experimental.pallas import tpu as pltpu

_LANE = 128
_TILE_BYTES = 4 * 1024 * 1024          # per-pipeline-buffer input-tile budget
_VMEM_LIMIT_BYTES = 32 * 1024 * 1024   # covers 16 MiB of buffers + headroom


def _default_n_splits() -> int:
    """2-way TensorCore split only on multi-TC chips (v7x); 1 elsewhere."""
    try:
        kind = jax.devices()[0].device_kind.lower()
    except Exception:
        return 1
    return 2 if ("v7" in kind or "7x" in kind) else 1


_DEFAULT_SPLITS = _default_n_splits()


def _sse_kernel(x_ref, y_ref, partial_ref, acc_ref, *,
                rows, tile_rows, steps, acc_rows, need_mask):
    s = pl.program_id(0)          # TensorCore split axis ("parallel")
    i = pl.program_id(1)          # streaming step within the split ("arbitrary")

    @pl.when(i == 0)
    def _():
        acc_ref[...] = jnp.zeros_like(acc_ref)

    # Cast to f32 inside the kernel (inputs stream in their native dtype).
    d = x_ref[...].astype(jnp.float32) - y_ref[...].astype(jnp.float32)
    sq = d * d

    n_chunks = tile_rows // acc_rows

    def _accumulate(vals):
        # Register-chained fold over tile-aligned sub-slices; only the final
        # (acc_rows, 128) result touches the VMEM accumulator (tiny vld/vst).
        total = vals[0:acc_rows, :]
        for j in range(1, n_chunks):
            total = total + vals[j * acc_rows:(j + 1) * acc_rows, :]
        acc_ref[...] += total

    if need_mask:
        b = s * steps + i                       # unclamped block index
        block_end = (b + 1) * tile_rows

        @pl.when(block_end <= rows)             # steady state: no mask ops
        def _():
            _accumulate(sq)

        @pl.when(block_end > rows)              # ragged tail / overrun step
        def _():
            row_ids = jax.lax.broadcasted_iota(jnp.int32, sq.shape, 0)
            global_row = b * tile_rows + row_ids
            _accumulate(jnp.where(global_row < rows, sq, jnp.float32(0.0)))
    else:
        _accumulate(sq)

    @pl.when(i == pl.num_programs(1) - 1)
    def _():
        # One small XLU reduce + one scalar SMEM store per split (epilogue).
        partial_ref[0, 0] = jnp.sum(acc_ref[...])


@functools.partial(jax.jit,
                   static_argnames=("max_val", "n_splits", "tile_cap_rows"))
def psnr_loss_pallas(x, y, max_val: float = 1.0,
                     n_splits=None, tile_cap_rows=None):
    assert x.shape == y.shape, "input and target must have the same shape"
    n = 1
    for dim in x.shape:
        n *= int(dim)
    itemsize = int(x.dtype.itemsize)

    xf = x.reshape(-1)
    yf = y.reshape(-1)
    if n % _LANE != 0:
        # TODO(synk): rare ragged-lane fallback still materializes a padded
        # copy; typical image tensors (n % 128 == 0) take the copy-free path.
        pad = _LANE - (n % _LANE)
        xf = jnp.pad(xf, (0, pad))
        yf = jnp.pad(yf, (0, pad))

    rows = xf.shape[0] // _LANE
    x2 = xf.reshape(rows, _LANE)
    y2 = yf.reshape(rows, _LANE)

    # dtype-aware tile height: fixed byte budget per buffer so bf16/int8 get
    # 2x/4x taller tiles at the same VMEM footprint.
    tile_rows_max = max(8, _TILE_BYTES // (_LANE * itemsize))
    if tile_cap_rows is not None:
        tile_rows_max = int(tile_cap_rows)
    tile_rows = rows if rows <= tile_rows_max else tile_rows_max
    total_blocks = -(-rows // tile_rows)

    if n_splits is None:
        n_splits = _DEFAULT_SPLITS
    if total_blocks < 2:
        n_splits = 1
    steps = -(-total_blocks // n_splits)
    overrun = n_splits * steps != total_blocks
    need_mask = (rows % tile_rows != 0) or overrun

    if overrun:
        # Overrun steps re-read the last valid block; they are fully masked
        # out inside the kernel (their unclamped row base is >= rows).
        def in_map(s, i):
            return (jnp.minimum(s * steps + i, total_blocks - 1), 0)
    else:
        def in_map(s, i):
            return (s * steps + i, 0)

    # Small fixed accumulator: largest small height that divides the tile
    # (multi-step tiles are always a multiple of 128, so acc_rows = 128).
    acc_rows = tile_rows
    for cand in (128, 64, 32, 16, 8):
        if tile_rows % cand == 0:
            acc_rows = cand
            break

    kernel = functools.partial(
        _sse_kernel, rows=rows, tile_rows=tile_rows, steps=steps,
        acc_rows=acc_rows, need_mask=need_mask)

    partials = pl.pallas_call(
        kernel,
        out_shape=jax.ShapeDtypeStruct((n_splits, 1), jnp.float32),
        grid_spec=pltpu.PrefetchScalarGridSpec(
            num_scalar_prefetch=0,
            grid=(n_splits, steps),
            in_specs=[
                pl.BlockSpec((tile_rows, _LANE), in_map),
                pl.BlockSpec((tile_rows, _LANE), in_map),
            ],
            out_specs=pl.BlockSpec((1, 1), lambda s, i: (s, 0),
                                   memory_space=pltpu.SMEM),
            scratch_shapes=[pltpu.VMEM((acc_rows, _LANE), jnp.float32)],
        ),
        compiler_params=pltpu.CompilerParams(
            dimension_semantics=("parallel", "arbitrary"),
            vmem_limit_bytes=_VMEM_LIMIT_BYTES),
        cost_estimate=pl.CostEstimate(
            flops=3 * n, transcendentals=0,
            bytes_accessed=2 * n * itemsize + 8 * n_splits),
    )(x2, y2)

    # Scalar epilogue (combine per-core partials): mse -> -psnr.
    sse = jnp.sum(partials)
    mse = sse / n
    # -psnr = 10*log10(mse) - 20*log10(max_val); max_val term folds at trace time.
    ten_over_ln10 = 10.0 / math.log(10.0)
    const = 20.0 * math.log10(float(max_val))
    return ten_over_ln10 * jnp.log(mse) - jnp.float32(const)


def _reference(x, y, max_val):
    mse = jnp.mean((x.astype(jnp.float32) - y.astype(jnp.float32)) ** 2)
    return -10.0 * jnp.log10(jnp.float32(max_val * max_val) / mse)


if __name__ == "__main__":
    key = jax.random.PRNGKey(0)
    max_val = 1.0

    # (shape, dtype, extra static kwargs)
    cases = [
        ((2, 4, 16, 16), jnp.float32, {}),        # primary small NCHW case
        ((2, 4, 256, 257), jnp.float32, {}),      # larger, single big tile
        ((3, 3, 17, 19), jnp.float32, {}),        # n % 128 != 0: padded fallback
        ((2, 4, 16, 16), jnp.bfloat16, {}),       # narrow dtype (in-kernel cast)
        # Force small tiles + a 2-way split to exercise multi-step streaming,
        # ragged-tail masking and the overrun (clamped duplicate block) path
        # with small data even on single-TensorCore chips.
        ((2, 4, 256, 257), jnp.float32, dict(tile_cap_rows=64, n_splits=2)),
        ((2, 4, 256, 256), jnp.float32, dict(tile_cap_rows=64, n_splits=1)),
    ]

    for shape, dtype, kwargs in cases:
        kx, ky, key = jax.random.split(key, 3)
        x = jax.random.uniform(kx, shape, dtype=jnp.float32).astype(dtype)
        y = jax.random.uniform(ky, shape, dtype=jnp.float32).astype(dtype)

        loss = psnr_loss_pallas(x, y, max_val=max_val, **kwargs)
        loss = jax.block_until_ready(loss)

        ref = _reference(x, y, max_val)
        assert jnp.allclose(loss, ref, rtol=1e-4, atol=1e-4), (
            shape, dtype, kwargs, loss, ref)

    print("KERNEL_OK")
</pallas_src>

<mosaic_0001>
module attributes {stable_mosaic.version = 11 : i64} {
  func.func @_sse_kernel(%arg0: i32, %arg1: i32, %arg2: memref<16x128xf32, #tpu.memory_space<vmem>>, %arg3: memref<16x128xf32, #tpu.memory_space<vmem>>, %arg4: memref<1x1xf32, #tpu.memory_space<smem>>, %arg5: memref<16x128xf32, #tpu.memory_space<vmem>>) attributes {dimension_semantics = [#tpu.dimension_semantics<parallel>, #tpu.dimension_semantics<arbitrary>], iteration_bounds = array<i64: 1, 1>, scalar_prefetch = 0 : i64, scratch_operands = 1 : i64, tpu.core_type = #tpu.core_type<tc>, window_params = [{transform_indices = @transform_0, window_bounds = array<i64: 16, 128>}, {transform_indices = @transform_1, window_bounds = array<i64: 16, 128>}, {transform_indices = @transform_2, window_bounds = array<i64: 1, 1>}]} {
    %c0_i32 = arith.constant 0 : i32
    %0 = arith.cmpi eq, %arg1, %c0_i32 : i32
    %1 = arith.extui %0 : i1 to i32
    %c0_i32_0 = arith.constant 0 : i32
    %2 = arith.cmpi ne, %1, %c0_i32_0 : i32
    scf.if %2 {
      %cst = arith.constant 0.000000e+00 : f32
      %13 = vector.broadcast %cst : f32 to vector<16x128xf32>
      %c0_10 = arith.constant 0 : index
      %c0_11 = arith.constant 0 : index
      %14 = vector.load %arg5[%c0_10, %c0_11] : memref<16x128xf32, #tpu.memory_space<vmem>>, vector<16x128xf32>
      tpu.vector_store %arg5[%c0_10, %c0_11], %13 {strides = array<i32>} : memref<16x128xf32, #tpu.memory_space<vmem>>, vector<16x128xf32>,
    } else {
    }
    %c0 = arith.constant 0 : index
    %c0_1 = arith.constant 0 : index
    %3 = vector.load %arg2[%c0, %c0_1] : memref<16x128xf32, #tpu.memory_space<vmem>>, vector<16x128xf32>
    %c0_2 = arith.constant 0 : index
    %c0_3 = arith.constant 0 : index
    %4 = vector.load %arg3[%c0_2, %c0_3] : memref<16x128xf32, #tpu.memory_space<vmem>>, vector<16x128xf32>
    %5 = arith.subf %3, %4 : vector<16x128xf32>
    %6 = arith.mulf %5, %5 : vector<16x128xf32>
    %c0_4 = arith.constant 0 : index
    %c0_5 = arith.constant 0 : index
    %7 = vector.load %arg5[%c0_4, %c0_5] : memref<16x128xf32, #tpu.memory_space<vmem>>, vector<16x128xf32>
    %8 = arith.addf %7, %6 : vector<16x128xf32>
    %c0_6 = arith.constant 0 : index
    %c0_7 = arith.constant 0 : index
    %9 = vector.load %arg5[%c0_6, %c0_7] : memref<16x128xf32, #tpu.memory_space<vmem>>, vector<16x128xf32>
    tpu.vector_store %arg5[%c0_6, %c0_7], %8 {strides = array<i32>} : memref<16x128xf32, #tpu.memory_space<vmem>>, vector<16x128xf32>,
    %c0_i32_8 = arith.constant 0 : i32
    %10 = arith.cmpi eq, %arg1, %c0_i32_8 : i32
    %11 = arith.extui %10 : i1 to i32
    %c0_i32_9 = arith.constant 0 : i32
    %12 = arith.cmpi ne, %11, %c0_i32_9 : i32
    scf.if %12 {
      %c0_10 = arith.constant 0 : index
      %c0_11 = arith.constant 0 : index
      %13 = vector.load %arg5[%c0_10, %c0_11] : memref<16x128xf32, #tpu.memory_space<vmem>>, vector<16x128xf32>
      %14 = vector.shape_cast %13 : vector<16x128xf32> to vector<1x16x128xf32>
      %cst = arith.constant dense<0.000000e+00> : vector<1xf32>
      %15 = vector.multi_reduction <add>, %14, %cst [1, 2] : vector<1x16x128xf32> to vector<1xf32>
      %16 = vector.shape_cast %15 : vector<1xf32> to vector<1x1x1xf32>
      %17 = vector.extract %16[0, 0, 0] : f32 from vector<1x1x1xf32>
      %c0_12 = arith.constant 0 : index
      %c0_13 = arith.constant 0 : index
      %18 = memref.load %arg4[%c0_12, %c0_13] : memref<1x1xf32, #tpu.memory_space<smem>>
      memref.store %17, %arg4[%c0_12, %c0_13] : memref<1x1xf32, #tpu.memory_space<smem>>
    } else {
    }
    return
  }
  func.func @transform_0(%arg0: i32, %arg1: i32) -> (i32, i32) {
    %c1_i32 = arith.constant 1 : i32
    %0 = arith.muli %arg0, %c1_i32 : i32
    %1 = arith.addi %0, %arg1 : i32
    %c0_i32 = arith.constant 0 : i32
    %c0_i32_0 = arith.constant 0 : i32
    return %1, %c0_i32 : i32, i32
  }
  func.func @transform_1(%arg0: i32, %arg1: i32) -> (i32, i32) {
    %c1_i32 = arith.constant 1 : i32
    %0 = arith.muli %arg0, %c1_i32 : i32
    %1 = arith.addi %0, %arg1 : i32
    %c0_i32 = arith.constant 0 : i32
    %c0_i32_0 = arith.constant 0 : i32
    return %1, %c0_i32 : i32, i32
  }
  func.func @transform_2(%arg0: i32, %arg1: i32) -> (i32, i32) {
    %c0_i32 = arith.constant 0 : i32
    %c0_i32_0 = arith.constant 0 : i32
    return %arg0, %c0_i32 : i32, i32
  }
}

</mosaic_0001>

<bundles_post_ra>
// kernel: psnr_loss_pallas.1
= control target key start
LH: loop header
LB: loop body
LE: loop exit
PB: predicated region body
PF: predicated region fallthrough
CT: control target
= control target key end

     0   :  { %s168_s0 = inlined_call_operand.vmem [shape: f32[16,128], index: 0, kind: input, shape index: {}]   ;;  %s169_s1 = inlined_call_operand.vmem [shape: f32[16,128], index: 1, kind: input, shape index: {}]   ;;  %s170_s2 = inlined_call_operand.hbm [shape: f32[1,1], index: 2, kind: output, shape index: {}]  }
   0x1   :  { %v62_v0 = vld [vmem:[%s168_s0] sm:$0xff]  ;;  %v63_v1 = vld [vmem:[%s168_s0 + $0x8] sm:$0xff] }
   0x2   :  { %v64_v2 = vld [vmem:[%s169_s1] sm:$0xff]  ;;  %v65_v3 = vld [vmem:[%s169_s1 + $0x8] sm:$0xff] }
   0x3   :  { %v66_v4 = vsub.f32 %v62_v0, %v64_v2 }
   0x4   :  { %7 = vsyncpa [#allocation4], 0  ;;  %v67_v5 = vsub.f32 %v63_v1, %v65_v3  ;;  %s98_s18 = sshll.u32 %s170_s2, 4  ;;  %s137_s19 = smov [#allocation3]   ;;  %s99_s18 = int_to_ptr.hbm [resolvable:$true] %s98_s18 }
   0x5   :  { %v68_v6 = vmul.f32 %v66_v4, %v66_v4 }
   0x6   :  { %v69_v7 = vmul.f32 %v67_v5, %v67_v5 }
   0x8   :  { %v81_v8 = vadd.f32 %v69_v7, %v68_v6 }
   0xa   :  { %82 = vadd.xlane.f32.xlu0 %v81_v8 }
  0x7d   :  { %v83_v9 = vpop.xlane.xlu0 %82 }
  0x7e   :  { %v84_v10 = vrot.slane %v83_v9, 4 }
  0x80   :  { %v85_v11 = vadd.f32 %v84_v10, %v83_v9 }
  0x82   :  { %v86_v12 = vrot.slane %v85_v11, 2 }
  0x84   :  { %v87_v13 = vadd.f32 %v86_v12, %v85_v11 }
  0x86   :  { %v88_v14 = vrot.slane %v87_v13, 1 }
  0x88   :  { %v89_v15 = vadd.f32 %v88_v14, %v87_v13 }
  0x8a   :  { %120 = vpush %v89_v15 }
  0xbb   :  { %s121_s1 = spop %120 }
  0xbc   :  { %92 = sst [smem:[#allocation3]] %s121_s1 }
  0xbd   :  { %101 = dma.smem_to_hbm %s137_s19, 16, %s99_s18, [#allocation4]  }
  0xbe   :  { %135 = dma.done.wait [#allocation4], 16  }
  0xbf   :  { %136 = vsyncadd [#allocation4], 4294967280 }
  0xc0   :  { %106 = sfence }
  0xc1   :  { %107 = vsyncpa [#allocation4], 1 }

</bundles_post_ra>
